<compile_context>
chip_gen: v7x
topology: tpu7x:2x2x1
jax: 0.10.0
libtpu: 0.0.40
codegen_flags: <defaults>
</compile_context>

<pallas_src>
import numpy as np
import jax
import jax.numpy as jnp
from jax.experimental import pallas as pl
from jax.experimental.pallas import tpu as pltpu

EPS = 1e-13


# ----------------------------------------------------------------------------
# Fused kernel: ensemble layer + output-layer autoencoder + per-row scores.
# ----------------------------------------------------------------------------
def _make_fused_kernel(k, d_max, h_max, h_out, inv_k):
    def sigmoid(a):
        # sigma(x) = 0.5*tanh(x/2) + 0.5 : tanh lowers to the EUP slot, so the
        # transcendental does not steal VALU slots from the MAC loops.
        return 0.5 * jnp.tanh(0.5 * a) + 0.5

    def dual_mac(bias, n, term):
        # Two independent accumulators (even/odd terms) break the serial vadd
        # dependency chain; summed once at the end.  Helps latency-bound
        # small-batch shapes; costs nothing at large tiles (ILP already ample).
        acc_e = bias + term(0)
        if n == 1:
            return acc_e
        acc_o = term(1)
        for t in range(2, n):
            if t % 2 == 0:
                acc_e = acc_e + term(t)
            else:
                acc_o = acc_o + term(t)
        return acc_e + acc_o

    def kernel(x_ref, nmin_ref, invr_ref, w1_ref, b1_ref, w2_ref, b2_ref,
               mscale_ref, nmin_o_ref, invr_o_ref, w1o_ref, b1o_ref,
               w2o_ref, b2o_ref, s_ref, score_ref):
        # ---- ensemble layer (all k groups at once, batch on the lane axis) --
        # `norm` is live only through the encoder loop; it is re-materialized
        # from the VMEM-resident refs after the decoder (vreg-pressure fix).
        norm = (x_ref[...] - nmin_ref[...]) * invr_ref[...]      # (k, d_max, tb)

        # encoder: pre[i, j, :] = b1[i, j] + sum_d W1_i[d, j] * norm[i, d, :]
        # w1_ref[d] is a (k, h_max, 1) slab: already lane-broadcastable.
        hid = sigmoid(dual_mac(
            b1_ref[...], d_max,
            lambda d: w1_ref[d] * norm[:, d:d + 1, :]))          # (k, h_max, tb)

        # decoder
        rec = sigmoid(dual_mac(
            b2_ref[...], h_max,
            lambda j: w2_ref[j] * hid[:, j:j + 1, :]))           # (k, d_max, tb)

        # per-group RMSE; mscale holds 1/d_i on real rows, 0 on padded rows.
        # norm recomputed here (cheap; at worst CSE folds it back to baseline).
        norm = (x_ref[...] - nmin_ref[...]) * invr_ref[...]
        err = (rec - norm) ** 2 * mscale_ref[...]
        z = jnp.sqrt(jnp.sum(err, axis=1))                       # (k, tb) == S_l1 tile
        s_ref[...] = z

        # ---- output-layer autoencoder on S (k on sublanes, batch on lanes) --
        norm_s = (z - nmin_o_ref[...]) * invr_o_ref[...]         # (k, tb)
        hid_o = sigmoid(dual_mac(
            b1o_ref[...], k,
            lambda d: w1o_ref[d] * norm_s[d:d + 1, :]))          # (h_out, tb)
        rec_o = sigmoid(dual_mac(
            b2o_ref[...], h_out,
            lambda j: w2o_ref[j] * hid_o[j:j + 1, :]))           # (k, tb)

        err_o = (rec_o - norm_s) ** 2
        score_ref[...] = jnp.sqrt(jnp.sum(err_o, axis=0, keepdims=True) * inv_k)

    return kernel


def _round_up(a, m):
    return ((a + m - 1) // m) * m


def _choose_tb(B, k, d_max, h_max):
    """Batch-tile (lane-axis) selection.

    - Small B: one full-width block (no 128 alignment needed, no pad).
    - Large B: lane-dense multiple of 128, capped so the dual-accumulator MAC
      working set stays well under the 64-vreg budget (no spills); >= 2 grid
      steps so both v7x TensorCores get work; prefer a tile that divides B so
      no host-side pad (extra HBM round trip of the input) is needed.
    """
    if B <= 256:
        return B
    rows = k * max(d_max, h_max)
    cap = min(1024, max(128, (32 * 1024 // (3 * rows)) // 128 * 128))
    for tb in range(cap, 127, -128):
        if B % tb == 0 and B // tb >= 2:
            return tb
    return min(cap, _round_up(pl.cdiv(B, 2), 128))


def anomaly_detector_forward(xg, nmin, inv_rng, w1, b1, w2, b2, mscale,
                             nmin_o, inv_rng_o, w1o, b1o, w2o, b2o, *, tb=None):
    """Fused AnomalyDetector forward (eval path).

    xg:  (k, d_max, B)        group-gathered input, batch on the lane axis.
    w1:  (d_max, k, h_max, 1) encoder weights, per-d leading-axis slabs.
    w2:  (h_max, k, d_max, 1) decoder weights, per-j leading-axis slabs.
    w1o: (k, h_out, 1), w2o: (h_out, k, 1) output-AE weights.
    Returns (score (B,), S_l1 (k, B)).
    """
    k, d_max, B = xg.shape
    h_max = w1.shape[2]
    h_out = w1o.shape[1]

    if tb is None:
        tb = _choose_tb(B, k, d_max, h_max)
    nb = pl.cdiv(B, tb)
    B_pad = nb * tb
    if B_pad != B:
        # Fallback only (tb is chosen to divide B whenever possible). Padded
        # batch lanes compute independent garbage and are sliced off below.
        xg = jnp.pad(xg, ((0, 0), (0, 0), (0, B_pad - B)))

    def full(a):
        zeros = (0,) * a.ndim
        return pl.BlockSpec(a.shape, lambda b: zeros)   # VMEM-resident param

    kernel = _make_fused_kernel(k, d_max, h_max, h_out, 1.0 / k)

    s_kb, score = pl.pallas_call(
        kernel,
        out_shape=(jax.ShapeDtypeStruct((k, B_pad), jnp.float32),
                   jax.ShapeDtypeStruct((1, B_pad), jnp.float32)),
        grid=(nb,),
        in_specs=[pl.BlockSpec((k, d_max, tb), lambda b: (0, 0, b)),
                  full(nmin), full(inv_rng), full(w1), full(b1),
                  full(w2), full(b2), full(mscale),
                  full(nmin_o), full(inv_rng_o), full(w1o), full(b1o),
                  full(w2o), full(b2o)],
        out_specs=(pl.BlockSpec((k, tb), lambda b: (0, b)),
                   pl.BlockSpec((1, tb), lambda b: (0, b))),
        compiler_params=pltpu.CompilerParams(
            dimension_semantics=("parallel",)),
    )(xg, nmin, inv_rng, w1, b1, w2, b2, mscale,
      nmin_o, inv_rng_o, w1o, b1o, w2o, b2o)

    return score[0, :B], s_kb[:, :B]


# ----------------------------------------------------------------------------
# Pure-JAX reference (for correctness check of the kernel).
# ----------------------------------------------------------------------------
def reference_forward(x, v, params):
    zs = []
    for i, vi in enumerate(v):
        p = params["ens"][i]
        xi = x[:, jnp.asarray(vi)]
        norm = (xi - p["nmin"]) / (p["nmax"] - p["nmin"] + EPS)
        h = jax.nn.sigmoid(norm @ p["W1"] + p["b1"])
        rec = jax.nn.sigmoid(h @ p["W2"] + p["b2"])
        zs.append(jnp.sqrt(jnp.mean((rec - norm) ** 2, axis=1)).reshape(-1, 1))
    S = jnp.concatenate(zs, axis=1)
    po = params["out"]
    norm = (S - po["nmin"]) / (po["nmax"] - po["nmin"] + EPS)
    h = jax.nn.sigmoid(norm @ po["W1"] + po["b1"])
    rec = jax.nn.sigmoid(h @ po["W2"] + po["b2"])
    score = jnp.sqrt(jnp.mean((rec - norm) ** 2, axis=1))
    return S, score


# ----------------------------------------------------------------------------
# End-to-end test: build params, pack, run fused kernel, compare to reference.
# ----------------------------------------------------------------------------
def _run_case(seed, B, v, n_features, hidden_ratio=0.75):
    key = jax.random.PRNGKey(seed)
    k = len(v)
    d_sizes = [len(vi) for vi in v]
    h_sizes = [int(np.ceil(hidden_ratio * d)) for d in d_sizes]
    d_max, h_max = max(d_sizes), max(h_sizes)
    h_out = int(np.ceil(hidden_ratio * k))

    keys = jax.random.split(key, 1 + 4 * k + 4)
    x = jax.random.uniform(keys[0], (B, n_features), dtype=jnp.float32)
    x_np = np.asarray(x)

    # ---- pack group-major, zero-padded, batch-on-lanes tensors --------------
    xg = np.zeros((k, d_max, B), np.float32)
    nmin = np.zeros((k, d_max, 1), np.float32)
    nmax = np.ones((k, d_max, 1), np.float32)            # pad -> inv_rng ~ 1
    w1 = np.zeros((d_max, k, h_max, 1), np.float32)      # per-d slabs, lane dim 1
    b1 = np.zeros((k, h_max, 1), np.float32)
    w2 = np.zeros((h_max, k, d_max, 1), np.float32)      # per-j slabs
    b2 = np.zeros((k, d_max, 1), np.float32)
    mscale = np.zeros((k, d_max, 1), np.float32)         # 1/d_i real rows, 0 pad

    ref_ens = []
    ki = 1
    for i, vi in enumerate(v):
        d_i, h_i = d_sizes[i], h_sizes[i]
        be, bd = 1.0 / np.sqrt(d_i), 1.0 / np.sqrt(h_i)
        w1_i = np.asarray(jax.random.uniform(keys[ki + 0], (d_i, h_i),
                                             minval=-be, maxval=be), np.float32)
        b1_i = np.asarray(jax.random.uniform(keys[ki + 1], (h_i,),
                                             minval=-be, maxval=be), np.float32)
        w2_i = np.asarray(jax.random.uniform(keys[ki + 2], (h_i, d_i),
                                             minval=-bd, maxval=bd), np.float32)
        b2_i = np.asarray(jax.random.uniform(keys[ki + 3], (d_i,),
                                             minval=-bd, maxval=bd), np.float32)
        ki += 4
        xi = x_np[:, vi]                                 # (B, d_i)
        nmin_i, nmax_i = xi.min(axis=0), xi.max(axis=0)  # "trained" normalizer

        xg[i, :d_i, :] = xi.T
        nmin[i, :d_i, 0] = nmin_i
        nmax[i, :d_i, 0] = nmax_i
        w1[:d_i, i, :h_i, 0] = w1_i
        b1[i, :h_i, 0] = b1_i
        w2[:h_i, i, :d_i, 0] = w2_i
        b2[i, :d_i, 0] = b2_i
        mscale[i, :d_i, 0] = 1.0 / d_i

        ref_ens.append(dict(W1=jnp.asarray(w1_i), b1=jnp.asarray(b1_i),
                            W2=jnp.asarray(w2_i), b2=jnp.asarray(b2_i),
                            nmin=jnp.asarray(nmin_i), nmax=jnp.asarray(nmax_i)))

    inv_rng = (1.0 / (nmax - nmin + EPS)).astype(np.float32)

    # output-layer autoencoder params
    be, bd = 1.0 / np.sqrt(k), 1.0 / np.sqrt(h_out)
    W1o = np.asarray(jax.random.uniform(keys[ki + 0], (k, h_out),
                                        minval=-be, maxval=be), np.float32)
    b1o = np.asarray(jax.random.uniform(keys[ki + 1], (h_out,),
                                        minval=-be, maxval=be), np.float32)
    W2o = np.asarray(jax.random.uniform(keys[ki + 2], (h_out, k),
                                        minval=-bd, maxval=bd), np.float32)
    b2o = np.asarray(jax.random.uniform(keys[ki + 3], (k,),
                                        minval=-bd, maxval=bd), np.float32)
    nmin_o = np.zeros((k, 1), np.float32)
    nmax_o = np.ones((k, 1), np.float32)
    inv_rng_o = (1.0 / (nmax_o - nmin_o + EPS)).astype(np.float32)

    # ---- run fused Pallas kernel --------------------------------------------
    score, S_kb = anomaly_detector_forward(
        jnp.asarray(xg), jnp.asarray(nmin), jnp.asarray(inv_rng),
        jnp.asarray(w1), jnp.asarray(b1), jnp.asarray(w2), jnp.asarray(b2),
        jnp.asarray(mscale), jnp.asarray(nmin_o), jnp.asarray(inv_rng_o),
        jnp.asarray(W1o[:, :, None]), jnp.asarray(b1o.reshape(-1, 1)),
        jnp.asarray(W2o[:, :, None]), jnp.asarray(b2o.reshape(-1, 1)))
    score = jax.block_until_ready(score)

    # ---- verify against plain-JAX reference ---------------------------------
    params_ref = dict(
        ens=ref_ens,
        out=dict(W1=jnp.asarray(W1o), b1=jnp.asarray(b1o),
                 W2=jnp.asarray(W2o), b2=jnp.asarray(b2o),
                 nmin=jnp.asarray(nmin_o[:, 0]), nmax=jnp.asarray(nmax_o[:, 0])))
    S_ref, score_ref = reference_forward(x, v, params_ref)

    np.testing.assert_allclose(np.asarray(S_kb).T, np.asarray(S_ref),
                               rtol=1e-4, atol=1e-5)
    np.testing.assert_allclose(np.asarray(score), np.asarray(score_ref),
                               rtol=1e-4, atol=1e-5)


if __name__ == "__main__":
    # feature groups (the "v" of AnomalyDetector); unequal sizes on purpose
    v = [[0, 1, 2, 3, 4], [5, 6, 7, 8], [9, 10, 11, 12], [13, 14, 15]]
    # tiny batch: single full-width block (tb = B, no pad)
    _run_case(seed=0, B=8, v=v, n_features=16)
    # larger batch: multi-step lane-dense grid (tb multiple of 128, nb >= 2,
    # "parallel" sharding across v7x TensorCores, no host-side pad)
    _run_case(seed=0, B=384, v=v, n_features=16)
    print("KERNEL_OK")
</pallas_src>

<mosaic_0001>
module attributes {stable_mosaic.version = 11 : i64} {
  func.func @kernel(%arg0: i32, %arg1: memref<4x5x8xf32, #tpu.memory_space<vmem>>, %arg2: memref<4x5x1xf32, #tpu.memory_space<vmem>>, %arg3: memref<4x5x1xf32, #tpu.memory_space<vmem>>, %arg4: memref<5x4x4x1xf32, #tpu.memory_space<vmem>>, %arg5: memref<4x4x1xf32, #tpu.memory_space<vmem>>, %arg6: memref<4x4x5x1xf32, #tpu.memory_space<vmem>>, %arg7: memref<4x5x1xf32, #tpu.memory_space<vmem>>, %arg8: memref<4x5x1xf32, #tpu.memory_space<vmem>>, %arg9: memref<4x1xf32, #tpu.memory_space<vmem>>, %arg10: memref<4x1xf32, #tpu.memory_space<vmem>>, %arg11: memref<4x3x1xf32, #tpu.memory_space<vmem>>, %arg12: memref<3x1xf32, #tpu.memory_space<vmem>>, %arg13: memref<3x4x1xf32, #tpu.memory_space<vmem>>, %arg14: memref<4x1xf32, #tpu.memory_space<vmem>>, %arg15: memref<4x8xf32, #tpu.memory_space<vmem>>, %arg16: memref<1x8xf32, #tpu.memory_space<vmem>>) attributes {dimension_semantics = [#tpu.dimension_semantics<parallel>], iteration_bounds = array<i64: 1>, scalar_prefetch = 0 : i64, scratch_operands = 0 : i64, tpu.core_type = #tpu.core_type<tc>, window_params = [{transform_indices = @transform_0, window_bounds = array<i64: 4, 5, 8>}, {pipeline_mode = #tpu.pipeline_mode<synchronous>, transform_indices = @transform_1, window_bounds = array<i64: 4, 5, 1>}, {pipeline_mode = #tpu.pipeline_mode<synchronous>, transform_indices = @transform_2, window_bounds = array<i64: 4, 5, 1>}, {pipeline_mode = #tpu.pipeline_mode<synchronous>, transform_indices = @transform_3, window_bounds = array<i64: 5, 4, 4, 1>}, {pipeline_mode = #tpu.pipeline_mode<synchronous>, transform_indices = @transform_4, window_bounds = array<i64: 4, 4, 1>}, {pipeline_mode = #tpu.pipeline_mode<synchronous>, transform_indices = @transform_5, window_bounds = array<i64: 4, 4, 5, 1>}, {pipeline_mode = #tpu.pipeline_mode<synchronous>, transform_indices = @transform_6, window_bounds = array<i64: 4, 5, 1>}, {pipeline_mode = #tpu.pipeline_mode<synchronous>, transform_indices = @transform_7, window_bounds = array<i64: 4, 5, 1>}, {pipeline_mode = #tpu.pipeline_mode<synchronous>, transform_indices = @transform_8, window_bounds = array<i64: 4, 1>}, {pipeline_mode = #tpu.pipeline_mode<synchronous>, transform_indices = @transform_9, window_bounds = array<i64: 4, 1>}, {pipeline_mode = #tpu.pipeline_mode<synchronous>, transform_indices = @transform_10, window_bounds = array<i64: 4, 3, 1>}, {pipeline_mode = #tpu.pipeline_mode<synchronous>, transform_indices = @transform_11, window_bounds = array<i64: 3, 1>}, {pipeline_mode = #tpu.pipeline_mode<synchronous>, transform_indices = @transform_12, window_bounds = array<i64: 3, 4, 1>}, {pipeline_mode = #tpu.pipeline_mode<synchronous>, transform_indices = @transform_13, window_bounds = array<i64: 4, 1>}, {transform_indices = @transform_14, window_bounds = array<i64: 4, 8>}, {transform_indices = @transform_15, window_bounds = array<i64: 1, 8>}]} {
    %c0 = arith.constant 0 : index
    %c0_0 = arith.constant 0 : index
    %c0_1 = arith.constant 0 : index
    %0 = vector.load %arg1[%c0, %c0_0, %c0_1] : memref<4x5x8xf32, #tpu.memory_space<vmem>>, vector<4x5x8xf32>
    %c0_2 = arith.constant 0 : index
    %c0_3 = arith.constant 0 : index
    %c0_4 = arith.constant 0 : index
    %1 = vector.load %arg2[%c0_2, %c0_3, %c0_4] : memref<4x5x1xf32, #tpu.memory_space<vmem>>, vector<4x5x1xf32>
    %2 = vector.broadcast %1 : vector<4x5x1xf32> to vector<4x5x8xf32>
    %3 = arith.subf %0, %2 : vector<4x5x8xf32>
    %c0_5 = arith.constant 0 : index
    %c0_6 = arith.constant 0 : index
    %c0_7 = arith.constant 0 : index
    %4 = vector.load %arg3[%c0_5, %c0_6, %c0_7] : memref<4x5x1xf32, #tpu.memory_space<vmem>>, vector<4x5x1xf32>
    %5 = vector.broadcast %4 : vector<4x5x1xf32> to vector<4x5x8xf32>
    %6 = arith.mulf %3, %5 : vector<4x5x8xf32>
    %c0_8 = arith.constant 0 : index
    %c0_9 = arith.constant 0 : index
    %c0_10 = arith.constant 0 : index
    %7 = vector.load %arg5[%c0_8, %c0_9, %c0_10] : memref<4x4x1xf32, #tpu.memory_space<vmem>>, vector<4x4x1xf32>
    %c0_11 = arith.constant 0 : index
    %c0_12 = arith.constant 0 : index
    %c0_13 = arith.constant 0 : index
    %c0_14 = arith.constant 0 : index
    %8 = vector.load %arg4[%c0_11, %c0_12, %c0_13, %c0_14] : memref<5x4x4x1xf32, #tpu.memory_space<vmem>>, vector<1x4x4x1xf32>
    %9 = vector.shape_cast %8 : vector<1x4x4x1xf32> to vector<4x4x1xf32>
    %10 = vector.extract_strided_slice %6 {offsets = [0, 0, 0], sizes = [4, 1, 8], strides = [1, 1, 1]} : vector<4x5x8xf32> to vector<4x1x8xf32>
    %11 = vector.broadcast %9 : vector<4x4x1xf32> to vector<4x4x8xf32>
    %12 = vector.broadcast %10 : vector<4x1x8xf32> to vector<4x4x8xf32>
    %13 = arith.mulf %11, %12 : vector<4x4x8xf32>
    %14 = vector.broadcast %7 : vector<4x4x1xf32> to vector<4x4x8xf32>
    %15 = arith.addf %14, %13 : vector<4x4x8xf32>
    %c1 = arith.constant 1 : index
    %c0_15 = arith.constant 0 : index
    %c0_16 = arith.constant 0 : index
    %c0_17 = arith.constant 0 : index
    %16 = vector.load %arg4[%c1, %c0_15, %c0_16, %c0_17] : memref<5x4x4x1xf32, #tpu.memory_space<vmem>>, vector<1x4x4x1xf32>
    %17 = vector.shape_cast %16 : vector<1x4x4x1xf32> to vector<4x4x1xf32>
    %18 = vector.extract_strided_slice %6 {offsets = [0, 1, 0], sizes = [4, 1, 8], strides = [1, 1, 1]} : vector<4x5x8xf32> to vector<4x1x8xf32>
    %19 = vector.broadcast %17 : vector<4x4x1xf32> to vector<4x4x8xf32>
    %20 = vector.broadcast %18 : vector<4x1x8xf32> to vector<4x4x8xf32>
    %21 = arith.mulf %19, %20 : vector<4x4x8xf32>
    %c2 = arith.constant 2 : index
    %c0_18 = arith.constant 0 : index
    %c0_19 = arith.constant 0 : index
    %c0_20 = arith.constant 0 : index
    %22 = vector.load %arg4[%c2, %c0_18, %c0_19, %c0_20] : memref<5x4x4x1xf32, #tpu.memory_space<vmem>>, vector<1x4x4x1xf32>
    %23 = vector.shape_cast %22 : vector<1x4x4x1xf32> to vector<4x4x1xf32>
    %24 = vector.extract_strided_slice %6 {offsets = [0, 2, 0], sizes = [4, 1, 8], strides = [1, 1, 1]} : vector<4x5x8xf32> to vector<4x1x8xf32>
    %25 = vector.broadcast %23 : vector<4x4x1xf32> to vector<4x4x8xf32>
    %26 = vector.broadcast %24 : vector<4x1x8xf32> to vector<4x4x8xf32>
    %27 = arith.mulf %25, %26 : vector<4x4x8xf32>
    %28 = arith.addf %15, %27 : vector<4x4x8xf32>
    %c3 = arith.constant 3 : index
    %c0_21 = arith.constant 0 : index
    %c0_22 = arith.constant 0 : index
    %c0_23 = arith.constant 0 : index
    %29 = vector.load %arg4[%c3, %c0_21, %c0_22, %c0_23] : memref<5x4x4x1xf32, #tpu.memory_space<vmem>>, vector<1x4x4x1xf32>
    %30 = vector.shape_cast %29 : vector<1x4x4x1xf32> to vector<4x4x1xf32>
    %31 = vector.extract_strided_slice %6 {offsets = [0, 3, 0], sizes = [4, 1, 8], strides = [1, 1, 1]} : vector<4x5x8xf32> to vector<4x1x8xf32>
    %32 = vector.broadcast %30 : vector<4x4x1xf32> to vector<4x4x8xf32>
    %33 = vector.broadcast %31 : vector<4x1x8xf32> to vector<4x4x8xf32>
    %34 = arith.mulf %32, %33 : vector<4x4x8xf32>
    %35 = arith.addf %21, %34 : vector<4x4x8xf32>
    %c4 = arith.constant 4 : index
    %c0_24 = arith.constant 0 : index
    %c0_25 = arith.constant 0 : index
    %c0_26 = arith.constant 0 : index
    %36 = vector.load %arg4[%c4, %c0_24, %c0_25, %c0_26] : memref<5x4x4x1xf32, #tpu.memory_space<vmem>>, vector<1x4x4x1xf32>
    %37 = vector.shape_cast %36 : vector<1x4x4x1xf32> to vector<4x4x1xf32>
    %38 = vector.extract_strided_slice %6 {offsets = [0, 4, 0], sizes = [4, 1, 8], strides = [1, 1, 1]} : vector<4x5x8xf32> to vector<4x1x8xf32>
    %39 = vector.broadcast %37 : vector<4x4x1xf32> to vector<4x4x8xf32>
    %40 = vector.broadcast %38 : vector<4x1x8xf32> to vector<4x4x8xf32>
    %41 = arith.mulf %39, %40 : vector<4x4x8xf32>
    %42 = arith.addf %28, %41 : vector<4x4x8xf32>
    %43 = arith.addf %42, %35 : vector<4x4x8xf32>
    %cst = arith.constant 5.000000e-01 : f32
    %44 = vector.broadcast %cst : f32 to vector<4x4x8xf32>
    %45 = arith.mulf %44, %43 : vector<4x4x8xf32>
    %46 = math.tanh %45 : vector<4x4x8xf32>
    %cst_27 = arith.constant 5.000000e-01 : f32
    %47 = vector.broadcast %cst_27 : f32 to vector<4x4x8xf32>
    %48 = arith.mulf %47, %46 : vector<4x4x8xf32>
    %cst_28 = arith.constant 5.000000e-01 : f32
    %49 = vector.broadcast %cst_28 : f32 to vector<4x4x8xf32>
    %50 = arith.addf %48, %49 : vector<4x4x8xf32>
    %c0_29 = arith.constant 0 : index
    %c0_30 = arith.constant 0 : index
    %c0_31 = arith.constant 0 : index
    %51 = vector.load %arg7[%c0_29, %c0_30, %c0_31] : memref<4x5x1xf32, #tpu.memory_space<vmem>>, vector<4x5x1xf32>
    %c0_32 = arith.constant 0 : index
    %c0_33 = arith.constant 0 : index
    %c0_34 = arith.constant 0 : index
    %c0_35 = arith.constant 0 : index
    %52 = vector.load %arg6[%c0_32, %c0_33, %c0_34, %c0_35] : memref<4x4x5x1xf32, #tpu.memory_space<vmem>>, vector<1x4x5x1xf32>
    %53 = vector.shape_cast %52 : vector<1x4x5x1xf32> to vector<4x5x1xf32>
    %54 = vector.extract_strided_slice %50 {offsets = [0, 0, 0], sizes = [4, 1, 8], strides = [1, 1, 1]} : vector<4x4x8xf32> to vector<4x1x8xf32>
    %55 = vector.broadcast %53 : vector<4x5x1xf32> to vector<4x5x8xf32>
    %56 = vector.broadcast %54 : vector<4x1x8xf32> to vector<4x5x8xf32>
    %57 = arith.mulf %55, %56 : vector<4x5x8xf32>
    %58 = vector.broadcast %51 : vector<4x5x1xf32> to vector<4x5x8xf32>
    %59 = arith.addf %58, %57 : vector<4x5x8xf32>
    %c1_36 = arith.constant 1 : index
    %c0_37 = arith.constant 0 : index
    %c0_38 = arith.constant 0 : index
    %c0_39 = arith.constant 0 : index
    %60 = vector.load %arg6[%c1_36, %c0_37, %c0_38, %c0_39] : memref<4x4x5x1xf32, #tpu.memory_space<vmem>>, vector<1x4x5x1xf32>
    %61 = vector.shape_cast %60 : vector<1x4x5x1xf32> to vector<4x5x1xf32>
    %62 = vector.extract_strided_slice %50 {offsets = [0, 1, 0], sizes = [4, 1, 8], strides = [1, 1, 1]} : vector<4x4x8xf32> to vector<4x1x8xf32>
    %63 = vector.broadcast %61 : vector<4x5x1xf32> to vector<4x5x8xf32>
    %64 = vector.broadcast %62 : vector<4x1x8xf32> to vector<4x5x8xf32>
    %65 = arith.mulf %63, %64 : vector<4x5x8xf32>
    %c2_40 = arith.constant 2 : index
    %c0_41 = arith.constant 0 : index
    %c0_42 = arith.constant 0 : index
    %c0_43 = arith.constant 0 : index
    %66 = vector.load %arg6[%c2_40, %c0_41, %c0_42, %c0_43] : memref<4x4x5x1xf32, #tpu.memory_space<vmem>>, vector<1x4x5x1xf32>
    %67 = vector.shape_cast %66 : vector<1x4x5x1xf32> to vector<4x5x1xf32>
    %68 = vector.extract_strided_slice %50 {offsets = [0, 2, 0], sizes = [4, 1, 8], strides = [1, 1, 1]} : vector<4x4x8xf32> to vector<4x1x8xf32>
    %69 = vector.broadcast %67 : vector<4x5x1xf32> to vector<4x5x8xf32>
    %70 = vector.broadcast %68 : vector<4x1x8xf32> to vector<4x5x8xf32>
    %71 = arith.mulf %69, %70 : vector<4x5x8xf32>
    %72 = arith.addf %59, %71 : vector<4x5x8xf32>
    %c3_44 = arith.constant 3 : index
    %c0_45 = arith.constant 0 : index
    %c0_46 = arith.constant 0 : index
    %c0_47 = arith.constant 0 : index
    %73 = vector.load %arg6[%c3_44, %c0_45, %c0_46, %c0_47] : memref<4x4x5x1xf32, #tpu.memory_space<vmem>>, vector<1x4x5x1xf32>
    %74 = vector.shape_cast %73 : vector<1x4x5x1xf32> to vector<4x5x1xf32>
    %75 = vector.extract_strided_slice %50 {offsets = [0, 3, 0], sizes = [4, 1, 8], strides = [1, 1, 1]} : vector<4x4x8xf32> to vector<4x1x8xf32>
    %76 = vector.broadcast %74 : vector<4x5x1xf32> to vector<4x5x8xf32>
    %77 = vector.broadcast %75 : vector<4x1x8xf32> to vector<4x5x8xf32>
    %78 = arith.mulf %76, %77 : vector<4x5x8xf32>
    %79 = arith.addf %65, %78 : vector<4x5x8xf32>
    %80 = arith.addf %72, %79 : vector<4x5x8xf32>
    %cst_48 = arith.constant 5.000000e-01 : f32
    %81 = vector.broadcast %cst_48 : f32 to vector<4x5x8xf32>
    %82 = arith.mulf %81, %80 : vector<4x5x8xf32>
    %83 = math.tanh %82 : vector<4x5x8xf32>
    %cst_49 = arith.constant 5.000000e-01 : f32
    %84 = vector.broadcast %cst_49 : f32 to vector<4x5x8xf32>
    %85 = arith.mulf %84, %83 : vector<4x5x8xf32>
    %cst_50 = arith.constant 5.000000e-01 : f32
    %86 = vector.broadcast %cst_50 : f32 to vector<4x5x8xf32>
    %87 = arith.addf %85, %86 : vector<4x5x8xf32>
    %c0_51 = arith.constant 0 : index
    %c0_52 = arith.constant 0 : index
    %c0_53 = arith.constant 0 : index
    %88 = vector.load %arg1[%c0_51, %c0_52, %c0_53] : memref<4x5x8xf32, #tpu.memory_space<vmem>>, vector<4x5x8xf32>
    %c0_54 = arith.constant 0 : index
    %c0_55 = arith.constant 0 : index
    %c0_56 = arith.constant 0 : index
    %89 = vector.load %arg2[%c0_54, %c0_55, %c0_56] : memref<4x5x1xf32, #tpu.memory_space<vmem>>, vector<4x5x1xf32>
    %90 = vector.broadcast %89 : vector<4x5x1xf32> to vector<4x5x8xf32>
    %91 = arith.subf %88, %90 : vector<4x5x8xf32>
    %c0_57 = arith.constant 0 : index
    %c0_58 = arith.constant 0 : index
    %c0_59 = arith.constant 0 : index
    %92 = vector.load %arg3[%c0_57, %c0_58, %c0_59] : memref<4x5x1xf32, #tpu.memory_space<vmem>>, vector<4x5x1xf32>
    %93 = vector.broadcast %92 : vector<4x5x1xf32> to vector<4x5x8xf32>
    %94 = arith.mulf %91, %93 : vector<4x5x8xf32>
    %95 = arith.subf %87, %94 : vector<4x5x8xf32>
    %96 = arith.mulf %95, %95 : vector<4x5x8xf32>
    %c0_60 = arith.constant 0 : index
    %c0_61 = arith.constant 0 : index
    %c0_62 = arith.constant 0 : index
    %97 = vector.load %arg8[%c0_60, %c0_61, %c0_62] : memref<4x5x1xf32, #tpu.memory_space<vmem>>, vector<4x5x1xf32>
    %98 = vector.broadcast %97 : vector<4x5x1xf32> to vector<4x5x8xf32>
    %99 = arith.mulf %96, %98 : vector<4x5x8xf32>
    %cst_63 = arith.constant dense<0.000000e+00> : vector<4x8xf32>
    %100 = vector.multi_reduction <add>, %99, %cst_63 [1] : vector<4x5x8xf32> to vector<4x8xf32>
    %101 = math.sqrt %100 : vector<4x8xf32>
    %c0_64 = arith.constant 0 : index
    %c0_65 = arith.constant 0 : index
    %102 = vector.load %arg15[%c0_64, %c0_65] : memref<4x8xf32, #tpu.memory_space<vmem>>, vector<4x8xf32>
    tpu.vector_store %arg15[%c0_64, %c0_65], %101 {strides = array<i32>} : memref<4x8xf32, #tpu.memory_space<vmem>>, vector<4x8xf32>,
    %c0_66 = arith.constant 0 : index
    %c0_67 = arith.constant 0 : index
    %103 = vector.load %arg9[%c0_66, %c0_67] : memref<4x1xf32, #tpu.memory_space<vmem>>, vector<4x1xf32>
    %104 = vector.broadcast %103 : vector<4x1xf32> to vector<4x8xf32>
    %105 = arith.subf %101, %104 : vector<4x8xf32>
    %c0_68 = arith.constant 0 : index
    %c0_69 = arith.constant 0 : index
    %106 = vector.load %arg10[%c0_68, %c0_69] : memref<4x1xf32, #tpu.memory_space<vmem>>, vector<4x1xf32>
    %107 = vector.broadcast %106 : vector<4x1xf32> to vector<4x8xf32>
    %108 = arith.mulf %105, %107 : vector<4x8xf32>
    %c0_70 = arith.constant 0 : index
    %c0_71 = arith.constant 0 : index
    %109 = vector.load %arg12[%c0_70, %c0_71] : memref<3x1xf32, #tpu.memory_space<vmem>>, vector<3x1xf32>
    %c0_72 = arith.constant 0 : index
    %c0_73 = arith.constant 0 : index
    %c0_74 = arith.constant 0 : index
    %110 = vector.load %arg11[%c0_72, %c0_73, %c0_74] : memref<4x3x1xf32, #tpu.memory_space<vmem>>, vector<1x3x1xf32>
    %111 = vector.shape_cast %110 : vector<1x3x1xf32> to vector<3x1xf32>
    %112 = vector.extract_strided_slice %108 {offsets = [0, 0], sizes = [1, 8], strides = [1, 1]} : vector<4x8xf32> to vector<1x8xf32>
    %113 = vector.broadcast %111 : vector<3x1xf32> to vector<3x8xf32>
    %114 = vector.broadcast %112 : vector<1x8xf32> to vector<3x8xf32>
    %115 = arith.mulf %113, %114 : vector<3x8xf32>
    %116 = vector.broadcast %109 : vector<3x1xf32> to vector<3x8xf32>
    %117 = arith.addf %116, %115 : vector<3x8xf32>
    %c1_75 = arith.constant 1 : index
    %c0_76 = arith.constant 0 : index
    %c0_77 = arith.constant 0 : index
    %118 = vector.load %arg11[%c1_75, %c0_76, %c0_77] : memref<4x3x1xf32, #tpu.memory_space<vmem>>, vector<1x3x1xf32>
    %119 = vector.shape_cast %118 : vector<1x3x1xf32> to vector<3x1xf32>
    %120 = vector.extract_strided_slice %108 {offsets = [1, 0], sizes = [1, 8], strides = [1, 1]} : vector<4x8xf32> to vector<1x8xf32>
    %121 = vector.broadcast %119 : vector<3x1xf32> to vector<3x8xf32>
    %122 = vector.broadcast %120 : vector<1x8xf32> to vector<3x8xf32>
    %123 = arith.mulf %121, %122 : vector<3x8xf32>
    %c2_78 = arith.constant 2 : index
    %c0_79 = arith.constant 0 : index
    %c0_80 = arith.constant 0 : index
    %124 = vector.load %arg11[%c2_78, %c0_79, %c0_80] : memref<4x3x1xf32, #tpu.memory_space<vmem>>, vector<1x3x1xf32>
    %125 = vector.shape_cast %124 : vector<1x3x1xf32> to vector<3x1xf32>
    %126 = vector.extract_strided_slice %108 {offsets = [2, 0], sizes = [1, 8], strides = [1, 1]} : vector<4x8xf32> to vector<1x8xf32>
    %127 = vector.broadcast %125 : vector<3x1xf32> to vector<3x8xf32>
    %128 = vector.broadcast %126 : vector<1x8xf32> to vector<3x8xf32>
    %129 = arith.mulf %127, %128 : vector<3x8xf32>
    %130 = arith.addf %117, %129 : vector<3x8xf32>
    %c3_81 = arith.constant 3 : index
    %c0_82 = arith.constant 0 : index
    %c0_83 = arith.constant 0 : index
    %131 = vector.load %arg11[%c3_81, %c0_82, %c0_83] : memref<4x3x1xf32, #tpu.memory_space<vmem>>, vector<1x3x1xf32>
    %132 = vector.shape_cast %131 : vector<1x3x1xf32> to vector<3x1xf32>
    %133 = vector.extract_strided_slice %108 {offsets = [3, 0], sizes = [1, 8], strides = [1, 1]} : vector<4x8xf32> to vector<1x8xf32>
    %134 = vector.broadcast %132 : vector<3x1xf32> to vector<3x8xf32>
    %135 = vector.broadcast %133 : vector<1x8xf32> to vector<3x8xf32>
    %136 = arith.mulf %134, %135 : vector<3x8xf32>
    %137 = arith.addf %123, %136 : vector<3x8xf32>
    %138 = arith.addf %130, %137 : vector<3x8xf32>
    %cst_84 = arith.constant 5.000000e-01 : f32
    %139 = vector.broadcast %cst_84 : f32 to vector<3x8xf32>
    %140 = arith.mulf %139, %138 : vector<3x8xf32>
    %141 = math.tanh %140 : vector<3x8xf32>
    %cst_85 = arith.constant 5.000000e-01 : f32
    %142 = vector.broadcast %cst_85 : f32 to vector<3x8xf32>
    %143 = arith.mulf %142, %141 : vector<3x8xf32>
    %cst_86 = arith.constant 5.000000e-01 : f32
    %144 = vector.broadcast %cst_86 : f32 to vector<3x8xf32>
    %145 = arith.addf %143, %144 : vector<3x8xf32>
    %c0_87 = arith.constant 0 : index
    %c0_88 = arith.constant 0 : index
    %146 = vector.load %arg14[%c0_87, %c0_88] : memref<4x1xf32, #tpu.memory_space<vmem>>, vector<4x1xf32>
    %c0_89 = arith.constant 0 : index
    %c0_90 = arith.constant 0 : index
    %c0_91 = arith.constant 0 : index
    %147 = vector.load %arg13[%c0_89, %c0_90, %c0_91] : memref<3x4x1xf32, #tpu.memory_space<vmem>>, vector<1x4x1xf32>
    %148 = vector.shape_cast %147 : vector<1x4x1xf32> to vector<4x1xf32>
    %149 = vector.extract_strided_slice %145 {offsets = [0, 0], sizes = [1, 8], strides = [1, 1]} : vector<3x8xf32> to vector<1x8xf32>
    %150 = vector.broadcast %148 : vector<4x1xf32> to vector<4x8xf32>
    %151 = vector.broadcast %149 : vector<1x8xf32> to vector<4x8xf32>
    %152 = arith.mulf %150, %151 : vector<4x8xf32>
    %153 = vector.broadcast %146 : vector<4x1xf32> to vector<4x8xf32>
    %154 = arith.addf %153, %152 : vector<4x8xf32>
    %c1_92 = arith.constant 1 : index
    %c0_93 = arith.constant 0 : index
    %c0_94 = arith.constant 0 : index
    %155 = vector.load %arg13[%c1_92, %c0_93, %c0_94] : memref<3x4x1xf32, #tpu.memory_space<vmem>>, vector<1x4x1xf32>
    %156 = vector.shape_cast %155 : vector<1x4x1xf32> to vector<4x1xf32>
    %157 = vector.extract_strided_slice %145 {offsets = [1, 0], sizes = [1, 8], strides = [1, 1]} : vector<3x8xf32> to vector<1x8xf32>
    %158 = vector.broadcast %156 : vector<4x1xf32> to vector<4x8xf32>
    %159 = vector.broadcast %157 : vector<1x8xf32> to vector<4x8xf32>
    %160 = arith.mulf %158, %159 : vector<4x8xf32>
    %c2_95 = arith.constant 2 : index
    %c0_96 = arith.constant 0 : index
    %c0_97 = arith.constant 0 : index
    %161 = vector.load %arg13[%c2_95, %c0_96, %c0_97] : memref<3x4x1xf32, #tpu.memory_space<vmem>>, vector<1x4x1xf32>
    %162 = vector.shape_cast %161 : vector<1x4x1xf32> to vector<4x1xf32>
    %163 = vector.extract_strided_slice %145 {offsets = [2, 0], sizes = [1, 8], strides = [1, 1]} : vector<3x8xf32> to vector<1x8xf32>
    %164 = vector.broadcast %162 : vector<4x1xf32> to vector<4x8xf32>
    %165 = vector.broadcast %163 : vector<1x8xf32> to vector<4x8xf32>
    %166 = arith.mulf %164, %165 : vector<4x8xf32>
    %167 = arith.addf %154, %166 : vector<4x8xf32>
    %168 = arith.addf %167, %160 : vector<4x8xf32>
    %cst_98 = arith.constant 5.000000e-01 : f32
    %169 = vector.broadcast %cst_98 : f32 to vector<4x8xf32>
    %170 = arith.mulf %169, %168 : vector<4x8xf32>
    %171 = math.tanh %170 : vector<4x8xf32>
    %cst_99 = arith.constant 5.000000e-01 : f32
    %172 = vector.broadcast %cst_99 : f32 to vector<4x8xf32>
    %173 = arith.mulf %172, %171 : vector<4x8xf32>
    %cst_100 = arith.constant 5.000000e-01 : f32
    %174 = vector.broadcast %cst_100 : f32 to vector<4x8xf32>
    %175 = arith.addf %173, %174 : vector<4x8xf32>
    %176 = arith.subf %175, %108 : vector<4x8xf32>
    %177 = arith.mulf %176, %176 : vector<4x8xf32>
    %cst_101 = arith.constant dense<0.000000e+00> : vector<8xf32>
    %178 = vector.multi_reduction <add>, %177, %cst_101 [0] : vector<4x8xf32> to vector<8xf32>
    %179 = vector.shape_cast %178 : vector<8xf32> to vector<1x8xf32>
    %cst_102 = arith.constant 2.500000e-01 : f32
    %180 = vector.broadcast %cst_102 : f32 to vector<1x8xf32>
    %181 = arith.mulf %179, %180 : vector<1x8xf32>
    %182 = math.sqrt %181 : vector<1x8xf32>
    %c0_103 = arith.constant 0 : index
    %c0_104 = arith.constant 0 : index
    %183 = vector.load %arg16[%c0_103, %c0_104] : memref<1x8xf32, #tpu.memory_space<vmem>>, vector<1x8xf32>
    tpu.vector_store %arg16[%c0_103, %c0_104], %182 {strides = array<i32>} : memref<1x8xf32, #tpu.memory_space<vmem>>, vector<1x8xf32>,
    return
  }
  func.func @transform_0(%arg0: i32) -> (i32, i32, i32) {
    %c0_i32 = arith.constant 0 : i32
    %c0_i32_0 = arith.constant 0 : i32
    %c0_i32_1 = arith.constant 0 : i32
    return %c0_i32, %c0_i32_0, %arg0 : i32, i32, i32
  }
  func.func @transform_1(%arg0: i32) -> (i32, i32, i32) {
    %c0_i32 = arith.constant 0 : i32
    %c0_i32_0 = arith.constant 0 : i32
    %c0_i32_1 = arith.constant 0 : i32
    %c0_i32_2 = arith.constant 0 : i32
    return %c0_i32, %c0_i32_0, %c0_i32_1 : i32, i32, i32
  }
  func.func @transform_2(%arg0: i32) -> (i32, i32, i32) {
    %c0_i32 = arith.constant 0 : i32
    %c0_i32_0 = arith.constant 0 : i32
    %c0_i32_1 = arith.constant 0 : i32
    %c0_i32_2 = arith.constant 0 : i32
    return %c0_i32, %c0_i32_0, %c0_i32_1 : i32, i32, i32
  }
  func.func @transform_3(%arg0: i32) -> (i32, i32, i32, i32) {
    %c0_i32 = arith.constant 0 : i32
    %c0_i32_0 = arith.constant 0 : i32
    %c0_i32_1 = arith.constant 0 : i32
    %c0_i32_2 = arith.constant 0 : i32
    %c0_i32_3 = arith.constant 0 : i32
    return %c0_i32, %c0_i32_0, %c0_i32_1, %c0_i32_2 : i32, i32, i32, i32
  }
  func.func @transform_4(%arg0: i32) -> (i32, i32, i32) {
    %c0_i32 = arith.constant 0 : i32
    %c0_i32_0 = arith.constant 0 : i32
    %c0_i32_1 = arith.constant 0 : i32
    %c0_i32_2 = arith.constant 0 : i32
    return %c0_i32, %c0_i32_0, %c0_i32_1 : i32, i32, i32
  }
  func.func @transform_5(%arg0: i32) -> (i32, i32, i32, i32) {
    %c0_i32 = arith.constant 0 : i32
    %c0_i32_0 = arith.constant 0 : i32
    %c0_i32_1 = arith.constant 0 : i32
    %c0_i32_2 = arith.constant 0 : i32
    %c0_i32_3 = arith.constant 0 : i32
    return %c0_i32, %c0_i32_0, %c0_i32_1, %c0_i32_2 : i32, i32, i32, i32
  }
  func.func @transform_6(%arg0: i32) -> (i32, i32, i32) {
    %c0_i32 = arith.constant 0 : i32
    %c0_i32_0 = arith.constant 0 : i32
    %c0_i32_1 = arith.constant 0 : i32
    %c0_i32_2 = arith.constant 0 : i32
    return %c0_i32, %c0_i32_0, %c0_i32_1 : i32, i32, i32
  }
  func.func @transform_7(%arg0: i32) -> (i32, i32, i32) {
    %c0_i32 = arith.constant 0 : i32
    %c0_i32_0 = arith.constant 0 : i32
    %c0_i32_1 = arith.constant 0 : i32
    %c0_i32_2 = arith.constant 0 : i32
    return %c0_i32, %c0_i32_0, %c0_i32_1 : i32, i32, i32
  }
  func.func @transform_8(%arg0: i32) -> (i32, i32) {
    %c0_i32 = arith.constant 0 : i32
    %c0_i32_0 = arith.constant 0 : i32
    %c0_i32_1 = arith.constant 0 : i32
    return %c0_i32, %c0_i32_0 : i32, i32
  }
  func.func @transform_9(%arg0: i32) -> (i32, i32) {
    %c0_i32 = arith.constant 0 : i32
    %c0_i32_0 = arith.constant 0 : i32
    %c0_i32_1 = arith.constant 0 : i32
    return %c0_i32, %c0_i32_0 : i32, i32
  }
  func.func @transform_10(%arg0: i32) -> (i32, i32, i32) {
    %c0_i32 = arith.constant 0 : i32
    %c0_i32_0 = arith.constant 0 : i32
    %c0_i32_1 = arith.constant 0 : i32
    %c0_i32_2 = arith.constant 0 : i32
    return %c0_i32, %c0_i32_0, %c0_i32_1 : i32, i32, i32
  }
  func.func @transform_11(%arg0: i32) -> (i32, i32) {
    %c0_i32 = arith.constant 0 : i32
    %c0_i32_0 = arith.constant 0 : i32
    %c0_i32_1 = arith.constant 0 : i32
    return %c0_i32, %c0_i32_0 : i32, i32
  }
  func.func @transform_12(%arg0: i32) -> (i32, i32, i32) {
    %c0_i32 = arith.constant 0 : i32
    %c0_i32_0 = arith.constant 0 : i32
    %c0_i32_1 = arith.constant 0 : i32
    %c0_i32_2 = arith.constant 0 : i32
    return %c0_i32, %c0_i32_0, %c0_i32_1 : i32, i32, i32
  }
  func.func @transform_13(%arg0: i32) -> (i32, i32) {
    %c0_i32 = arith.constant 0 : i32
    %c0_i32_0 = arith.constant 0 : i32
    %c0_i32_1 = arith.constant 0 : i32
    return %c0_i32, %c0_i32_0 : i32, i32
  }
  func.func @transform_14(%arg0: i32) -> (i32, i32) {
    %c0_i32 = arith.constant 0 : i32
    %c0_i32_0 = arith.constant 0 : i32
    return %c0_i32, %arg0 : i32, i32
  }
  func.func @transform_15(%arg0: i32) -> (i32, i32) {
    %c0_i32 = arith.constant 0 : i32
    %c0_i32_0 = arith.constant 0 : i32
    return %c0_i32, %arg0 : i32, i32
  }
}

</mosaic_0001>

<bundles_post_ra>
// kernel: tpu_custom_call.1
= control target key start
LH: loop header
LB: loop body
LE: loop exit
PB: predicated region body
PF: predicated region fallthrough
CT: control target
= control target key end

     0   :  { %21 = vsyncpa [#allocation3], 0  ;;  %v1051_v2 = vmov 0   ;;  %s1491_s0 = inlined_call_operand.vmem [shape: f32[4,5,8], index: 0, kind: input, shape index: {}]   ;;  %s1492_s1 = inlined_call_operand.vmem [shape: f32[4,5,1], index: 1, kind: input, shape index: {}]   ;;  %s1493_s2 = inlined_call_operand.vmem [shape: f32[4,5,1], index: 2, kind: input, shape index: {}]   ;;  %s1494_s3 = inlined_call_operand.vmem [shape: f32[5,4,4,1], index: 3, kind: input, shape index: {}]   ;;  %s1495_s4 = inlined_call_operand.vmem [shape: f32[4,4,1], index: 4, kind: input, shape index: {}]   ;;  %s1496_s5 = inlined_call_operand.vmem [shape: f32[4,4,5,1], index: 5, kind: input, shape index: {}]   ;;  %s1497_s6 = inlined_call_operand.vmem [shape: f32[4,5,1], index: 6, kind: input, shape index: {}]   ;;  %s1498_s7 = inlined_call_operand.vmem [shape: f32[4,5,1], index: 7, kind: input, shape index: {}]   ;;  %s1499_s8 = inlined_call_operand.vmem [shape: f32[4,1], index: 8, kind: input, shape index: {}]   ;;  %s1500_s9 = inlined_call_operand.vmem [shape: f32[4,1], index: 9, kind: input, shape index: {}]   ;;  %s1501_s10 = inlined_call_operand.vmem [shape: f32[4,3,1], index: 10, kind: input, shape index: {}]   ;;  %s1502_s11 = inlined_call_operand.vmem [shape: f32[3,1], index: 11, kind: input, shape index: {}]   ;;  %s1503_s12 = inlined_call_operand.vmem [shape: f32[3,4,1], index: 12, kind: input, shape index: {}]   ;;  %s1504_s13 = inlined_call_operand.vmem [shape: f32[4,1], index: 13, kind: input, shape index: {}]   ;;  %s1505_s14 = inlined_call_operand.hbm [shape: f32[4,8], index: 14, kind: output, shape index: {0}]   ;;  %s1506_s15 = inlined_call_operand.hbm [shape: f32[1,8], index: 15, kind: output, shape index: {1}]  }
   0x1   :  { %v57_v0 = vld [vmem:[%s1492_s1 + $0x10] sm:$0x1f]  ;;  %v55_v1 = vld [vmem:[%s1492_s1] sm:$0x1f]  ;;  %972 = vset.pattern.permute.xlu1 %v1051_v2  ;;  %971 = vset.pattern.permute.xlu0 %v1051_v2  ;;  %v58_v3 = vld [vmem:[%s1492_s1 + $0x18] sm:$0x1f] }
   0x2   :  { %71 = vperm.xlu1 %972, %v57_v0   ;;  %61 = vperm.xlu0 %971, %v55_v1   ;;  %v56_v4 = vld [vmem:[%s1492_s1 + $0x8] sm:$0x1f]  ;;  %v83_v6 = vld [vmem:[%s1493_s2] sm:$0x1f]  ;;  %v86_v7 = vld [vmem:[%s1493_s2 + $0x18] sm:$0x1f] }
   0x3   :  { %v84_v5 = vld [vmem:[%s1493_s2 + $0x8] sm:$0x1f]  ;;  %v85_v8 = vld [vmem:[%s1493_s2 + $0x10] sm:$0x1f]  ;;  %v116_v9 = vld [vmem:[%s1494_s3 + $0x4] sm:$0xf] }
   0x4   :  { %v115_v10 = vld [vmem:[%s1494_s3] sm:$0xf]  ;;  %v118_v11 = vld [vmem:[%s1494_s3 + $0xc] sm:$0xf]  ;;  %v117_v12 = vld [vmem:[%s1494_s3 + $0x8] sm:$0xf] }
   0x5   :  { %v939_v13 = vld [vmem:[%s1494_s3 + $0x20] sm:$0xf] }
   0x6   :  { %76 = vperm.xlu1 %972, %v58_v3   ;;  %66 = vperm.xlu0 %971, %v56_v4   ;;  %v111_v14 = vld [vmem:[%s1495_s4] sm:$0xf] }
   0xa   :  { %94 = vperm.xlu1 %972, %v84_v5   ;;  %89 = vperm.xlu0 %971, %v83_v6  }
   0xe   :  { %104 = vperm.xlu1 %972, %v86_v7   ;;  %99 = vperm.xlu0 %971, %v85_v8  }
  0x12   :  { %126 = vperm.xlu1 %972, %v116_v9   ;;  %121 = vperm.xlu0 %971, %v115_v10  }
  0x16   :  { %136 = vperm.xlu1 %972, %v118_v11   ;;  %131 = vperm.xlu0 %971, %v117_v12  }
  0x17   :  { %22 = vsyncpa [#allocation5], 0  ;;  %v113_v15 = vld [vmem:[%s1495_s4 + $0x8] sm:$0xf]  ;;  %v112_v16 = vld [vmem:[%s1495_s4 + $0x4] sm:$0xf] }
  0x18   :  { %v935_v17 = vld [vmem:[%s1494_s3 + $0x10] sm:$0xf]  ;;  %v114_v18 = vld [vmem:[%s1495_s4 + $0xc] sm:$0xf]  ;;  %v941_v19 = vld [vmem:[%s1494_s3 + $0x28] sm:$0xf] }
  0x19   :  { %v940_v20 = vld [vmem:[%s1494_s3 + $0x24] sm:$0xf]  ;;  %v943_v21 = vld [vmem:[%s1494_s3 + $0x30] sm:$0xf]  ;;  %v942_v22 = vld [vmem:[%s1494_s3 + $0x2c] sm:$0xf] }
  0x1a   :  { %235 = vperm.xlu1 %972, %v939_v13   ;;  %161 = vperm.xlu0 %971, %v111_v14   ;;  %v936_v23 = vld [vmem:[%s1494_s3 + $0x14] sm:$0xf]  ;;  %v947_v24 = vld [vmem:[%s1494_s3 + $0x40] sm:$0xf]  ;;  %v938_v25 = vld [vmem:[%s1494_s3 + $0x1c] sm:$0xf] }
  0x1b   :  { %v937_v26 = vld [vmem:[%s1494_s3 + $0x18] sm:$0xf]  ;;  %v944_v28 = vld [vmem:[%s1494_s3 + $0x34] sm:$0xf]  ;;  %v948_v29 = vld [vmem:[%s1494_s3 + $0x44] sm:$0xf] }
  0x1c   :  { %v945_v27 = vld [vmem:[%s1494_s3 + $0x38] sm:$0xf]  ;;  %v946_v30 = vld [vmem:[%s1494_s3 + $0x3c] sm:$0xf]  ;;  %v950_v31 = vld [vmem:[%s1494_s3 + $0x4c] sm:$0xf] }
  0x1d   :  { %v949_v32 = vld [vmem:[%s1494_s3 + $0x48] sm:$0xf]  ;;  %v399_v34 = vld [vmem:[%s1496_s5] sm:$0x1f]  ;;  %v402_v35 = vld [vmem:[%s1496_s5 + $0x18] sm:$0x1f] }
  0x1e   :  { %171 = vperm.xlu1 %972, %v113_v15   ;;  %166 = vperm.xlu0 %971, %v112_v16   ;;  %v400_v33 = vld [vmem:[%s1496_s5 + $0x8] sm:$0x1f]  ;;  %v401_v36 = vld [vmem:[%s1496_s5 + $0x10] sm:$0x1f]  ;;  %v951_v37 = vld [vmem:[%s1496_s5 + $0x20] sm:$0x1f] }
  0x1f   :  { %v395_v38 = vld [vmem:[%s1497_s6] sm:$0x1f]  ;;  %v397_v41 = vld [vmem:[%s1497_s6 + $0x10] sm:$0x1f]  ;;  %v396_v42 = vld [vmem:[%s1497_s6 + $0x8] sm:$0x1f] }
  0x20   :  { %v959_v39 = vld [vmem:[%s1496_s5 + $0x60] sm:$0x1f]  ;;  %v952_v43 = vld [vmem:[%s1496_s5 + $0x28] sm:$0x1f]  ;;  %v398_v44 = vld [vmem:[%s1497_s6 + $0x18] sm:$0x1f] }
  0x21   :  { %v955_v40 = vld [vmem:[%s1496_s5 + $0x40] sm:$0x1f]  ;;  %v954_v45 = vld [vmem:[%s1496_s5 + $0x38] sm:$0x1f]  ;;  %v953_v46 = vld [vmem:[%s1496_s5 + $0x30] sm:$0x1f] }
  0x22   :  { %190 = vperm.xlu1 %972, %v935_v17   ;;  %176 = vperm.xlu0 %971, %v114_v18   ;;  %v957_v47 = vld [vmem:[%s1496_s5 + $0x50] sm:$0x1f]  ;;  %v956_v48 = vld [vmem:[%s1496_s5 + $0x48] sm:$0x1f]  ;;  %v958_v50 = vld [vmem:[%s1496_s5 + $0x58] sm:$0x1f]  ;;  %v139_v18 = vlaneseq }
  0x23   :  { %v960_v49 = vld [vmem:[%s1496_s5 + $0x68] sm:$0x1f]  ;;  %v962_v51 = vld [vmem:[%s1496_s5 + $0x78] sm:$0x1f]  ;;  %v961_v52 = vld [vmem:[%s1496_s5 + $0x70] sm:$0x1f] }
  0x24   :  { %v639_v53 = vld [vmem:[%s1498_s7 + $0x8] sm:$0x1f]  ;;  %v638_v54 = vld [vmem:[%s1498_s7] sm:$0x1f]  ;;  %v641_v55 = vld [vmem:[%s1498_s7 + $0x18] sm:$0x1f] }
  0x25   :  { %v640_v56 = vld [vmem:[%s1498_s7 + $0x10] sm:$0x1f]  ;;  %v752_v57 = vld [vmem:[%s1500_s9] sm:$0xf]  ;;  %v964_v61 = vld [vmem:[%s1501_s10 + $0x8] sm:$0x7] }
  0x26   :  { %245 = vperm.xlu1 %972, %v941_v19   ;;  %240 = vperm.xlu0 %971, %v940_v20   ;;  %v736_v58 = vld [vmem:[%s1499_s8] sm:$0xf]  ;;  %v963_v62 = vld [vmem:[%s1501_s10 + $0x4] sm:$0x7]  ;;  %v965_v0 = vld [vmem:[%s1501_s10 + $0xc] sm:$0x7] }
  0x27   :  { %v768_v59 = vld [vmem:[%s1502_s11] sm:$0x7]  ;;  %v967_v1 = vld [vmem:[%s1503_s12 + $0x8] sm:$0xf]  ;;  %v966_v5 = vld [vmem:[%s1503_s12 + $0x4] sm:$0xf] }
  0x28   :  { %v769_v60 = vld [vmem:[%s1501_s10] sm:$0x7]  ;;  %vm666_vm0 = vcmask 61440   ;;  %vm727_vm4 = vcmask 1041409   ;;  %vm729_vm5 = vcmask 1042434   ;;  %vm731_vm7 = vcmask 1043459  }
  0x29   :  { %v830_v63 = vld [vmem:[%s1503_s12] sm:$0xf]  ;;  %vm734_vm8 = vcmask 60416  }
  0x2a   :  { %284 = vperm.xlu1 %972, %v943_v21   ;;  %250 = vperm.xlu0 %971, %v942_v22   ;;  %v829_v2 = vld [vmem:[%s1504_s13] sm:$0xf]  ;;  %v140_v22 = vshrl.u32 %v139_v18, 7 }
  0x2b   :  { %v51_v19 = vld [vmem:[%s1491_s0] sm:$0x1f] }
  0x2e   :  { %195 = vperm.xlu1 %972, %v936_v23   ;;  %333 = vperm.xlu0 %971, %v947_v24  }
  0x32   :  { %205 = vperm.xlu1 %972, %v938_v25   ;;  %200 = vperm.xlu0 %971, %v937_v26  }
  0x36   :  { %294 = vperm.xlu1 %972, %v945_v27   ;;  %289 = vperm.xlu0 %971, %v944_v28   ;;  %v1350_v27 = vsub.s32 0, %v140_v22  ;;  %v1352_v28 = vsub.s32 2, %v140_v22 }
  0x3a   :  { %338 = vperm.xlu1 %972, %v948_v29   ;;  %299 = vperm.xlu0 %971, %v946_v30  }
  0x3e   :  { %348 = vperm.xlu1 %972, %v950_v31   ;;  %343 = vperm.xlu0 %971, %v949_v32   ;;  %v1356_v32 = vsub.s32 3, %v140_v22 }
  0x42   :  { %410 = vperm.xlu1 %972, %v400_v33   ;;  %405 = vperm.xlu0 %971, %v399_v34  }
  0x46   :  { %420 = vperm.xlu1 %972, %v402_v35   ;;  %415 = vperm.xlu0 %971, %v401_v36   ;;  %v1360_v35 = vsub.s32 1, %v140_v22  ;;  %v1362_v36 = vsub.s32 4, %v140_v22 }
  0x4a   :  { %474 = vperm.xlu1 %972, %v951_v37   ;;  %445 = vperm.xlu0 %971, %v395_v38  }
  0x4e   :  { %568 = vperm.xlu1 %972, %v959_v39   ;;  %519 = vperm.xlu0 %971, %v955_v40  }
  0x52   :  { %455 = vperm.xlu1 %972, %v397_v41   ;;  %450 = vperm.xlu0 %971, %v396_v42   ;;  %v52_v42 = vld [vmem:[%s1491_s0 + $0x8] sm:$0x1f] }
  0x56   :  { %479 = vperm.xlu1 %972, %v952_v43   ;;  %460 = vperm.xlu0 %971, %v398_v44  }
  0x5a   :  { %489 = vperm.xlu1 %972, %v954_v45   ;;  %484 = vperm.xlu0 %971, %v953_v46   ;;  %v54_v46 = vld [vmem:[%s1491_s0 + $0x18] sm:$0x1f] }
  0x5e   :  { %529 = vperm.xlu1 %972, %v957_v47   ;;  %524 = vperm.xlu0 %971, %v956_v48  }
  0x62   :  { %573 = vperm.xlu1 %972, %v960_v49   ;;  %534 = vperm.xlu0 %971, %v958_v50   ;;  %v53_v49 = vld [vmem:[%s1491_s0 + $0x10] sm:$0x1f]  ;;  %s1052_s0 = smov [#allocation2]  }
  0x63   :  { %s913_s22 = sshll.u32 %s1052_s0, 4  ;;  %s914_s22 = int_to_ptr.vmem [resolvable:$true] %s913_s22 }
  0x64   :  { %s1003_s23 = scalar_lea.vmem %s914_s22, 64  ;;  %p1008_p1 = scmp.lt.s32.totalorder %s914_s22, %s914_s22 }
  0x65   :  { %p1004_p0 = scmp.ne.s32.totalorder %s914_s22, %s1003_s23  ;;  %p1009_p2 = scmp.lt.s32.totalorder %s1003_s23, %s1003_s23 }
  0x66   :  { %583 = vperm.xlu1 %972, %v962_v51   ;;  %578 = vperm.xlu0 %971, %v961_v52  }
  0x67   :  { %p1010_p3 = por %p1009_p2, %p1008_p1 }
  0x69   :  { %p1011_p4 = pnand %p1010_p3, %p1004_p0 }
  0x6a   :  { %649 = vperm.xlu1 %972, %v639_v53   ;;  %644 = vperm.xlu0 %971, %v638_v54  }
  0x6e   :  { %659 = vperm.xlu1 %972, %v641_v55   ;;  %654 = vperm.xlu0 %971, %v640_v56  }
  0x72   :  { %755 = vperm.xlu1 %972, %v752_v57   ;;  %739 = vperm.xlu0 %971, %v736_v58  }
  0x76   :  { %782 = vperm.xlu1 %972, %v768_v59   ;;  %772 = vperm.xlu0 %971, %v769_v60  }
  0x7a   :  { %802 = vperm.xlu1 %972, %v964_v61   ;;  %790 = vperm.xlu0 %971, %v963_v62  }
  0x7e   :  { %833 = vperm.xlu1 %972, %v830_v63   ;;  %815 = vperm.xlu0 %971, %v965_v0  }
  0x81   :  { %v1332_v3 = vpop.permute.xlu1 %71  ;;  %v62_v4 = vpop.permute.xlu0 %61 }
  0x82   :  { %863 = vperm.xlu1 %972, %v967_v1   ;;  %843 = vperm.xlu0 %971, %v829_v2   ;;  %v79_v23 = vsub.f32 %v51_v19, %v62_v4  ;;  %v81_v58 = vsub.f32 %v53_v49, %v1332_v3 }
  0x85   :  { %v77_v6 = vpop.permute.xlu1 %76  ;;  %v67_v7 = vpop.permute.xlu0 %66 }
  0x86   :  { %851 = vperm.xlu0 %971, %v966_v5   ;;  %v80_v50 = vsub.f32 %v52_v42, %v67_v7  ;;  %v82_v54 = vsub.f32 %v54_v46, %v77_v6 }
  0x89   :  { %v95_v8 = vpop.permute.xlu1 %94  ;;  %v90_v9 = vpop.permute.xlu0 %89 }
  0x8a   :  { %v1348_v26 = vmul.f32 %v90_v9, %v79_v23  ;;  %v1379_v55 = vmul.f32 %v95_v8, %v80_v50 }
  0x8c   :  { %v142_v31 = vrot.slane %v1348_v26, %v1350_v27  ;;  %v256_v34 = vrot.slane %v1348_v26, %v1352_v28  ;;  %v305_v41 = vrot.slane %v1348_v26, %v1356_v32  ;;  %v211_v43 = vrot.slane %v1348_v26, %v1360_v35 }
  0x8d   :  { %v105_v10 = vpop.permute.xlu1 %104  ;;  %v100_v11 = vpop.permute.xlu0 %99  ;;  %v354_v45 = vrot.slane %v1348_v26, %v1362_v36  ;;  %v146_v0 = vrot.slane %v1379_v55, %v1350_v27  ;;  %v260_v1 = vrot.slane %v1379_v55, %v1352_v28  ;;  %v215_v4 = vrot.slane %v1379_v55, %v1360_v35 }
  0x8e   :  { %v1382_v61 = vmul.f32 %v105_v10, %v82_v54  ;;  %v1384_v63 = vmul.f32 %v100_v11, %v81_v58  ;;  %v309_v3 = vrot.slane %v1379_v55, %v1356_v32  ;;  %v358_v7 = vrot.slane %v1379_v55, %v1362_v36 }
  0x90   :  { %v154_v9 = vrot.slane %v1382_v61, %v1350_v27  ;;  %v150_v11 = vrot.slane %v1384_v63, %v1350_v27  ;;  %v313_v19 = vrot.slane %v1384_v63, %v1356_v32 }
  0x91   :  { %v127_v12 = vpop.permute.xlu1 %126  ;;  %v122_v13 = vpop.permute.xlu0 %121 }
  0x92   :  { %v155_v33 = vmul.f32 %v142_v31, %v122_v13  ;;  %v156_v8 = vmul.f32 %v146_v0, %v127_v12  ;;  %v264_v13 = vrot.slane %v1384_v63, %v1352_v28  ;;  %v219_v12 = vrot.slane %v1384_v63, %v1360_v35 }
  0x95   :  { %v1337_v14 = vpop.permute.xlu1 %136  ;;  %v1339_v15 = vpop.permute.xlu0 %131 }
  0x96   :  { %v158_v23 = vmul.f32 %v154_v9, %v1337_v14  ;;  %v366_v14 = vrot.slane %v1382_v61, %v1362_v36 }
  0x99   :  { %v236_v16 = vpop.permute.xlu1 %235  ;;  %v162_v17 = vpop.permute.xlu0 %161 }
  0x9a   :  { %v269_v39 = vmul.f32 %v256_v34, %v236_v16  ;;  %v179_v40 = vadd.f32 %v162_v17, %v155_v33  ;;  %v268_v16 = vrot.slane %v1382_v61, %v1352_v28  ;;  %v223_v17 = vrot.slane %v1382_v61, %v1360_v35 }
  0x9c   :  { %v273_v51 = vadd.f32 %v269_v39, %v179_v40 }
  0x9d   :  { %v1344_v20 = vpop.permute.xlu1 %171  ;;  %v167_v21 = vpop.permute.xlu0 %166 }
  0x9e   :  { %v180_v18 = vadd.f32 %v167_v21, %v156_v8  ;;  %v317_v21 = vrot.slane %v1382_v61, %v1356_v32 }
  0xa1   :  { %v191_v24 = vpop.permute.xlu1 %190  ;;  %v1346_v25 = vpop.permute.xlu0 %176 }
  0xa2   :  { %v224_v52 = vmul.f32 %v211_v43, %v191_v24  ;;  %v157_v24 = vmul.f32 %v150_v11, %v1339_v15  ;;  %v182_v42 = vadd.f32 %v1346_v25, %v158_v23 }
  0xa5   :  { %v246_v29 = vpop.permute.xlu1 %245  ;;  %v241_v30 = vpop.permute.xlu0 %240 }
  0xa6   :  { %v270_v10 = vmul.f32 %v260_v1, %v241_v30  ;;  %v271_v30 = vmul.f32 %v264_v13, %v246_v29 }
  0xa9   :  { %v285_v37 = vpop.permute.xlu1 %284  ;;  %v251_v38 = vpop.permute.xlu0 %250 }
  0xaa   :  { %v318_v44 = vmul.f32 %v305_v41, %v285_v37  ;;  %v272_v31 = vmul.f32 %v268_v16, %v251_v38  ;;  %v274_v37 = vadd.f32 %v270_v10, %v180_v18  ;;  %v181_v41 = vadd.f32 %v1344_v20, %v157_v24 }
  0xab   :  { %v362_v38 = vrot.slane %v1384_v63, %v1362_v36 }
  0xac   :  { %v322_v56 = vadd.f32 %v318_v44, %v224_v52  ;;  %v276_v46 = vadd.f32 %v272_v31, %v182_v42 }
  0xad   :  { %v196_v47 = vpop.permute.xlu1 %195  ;;  %v334_v48 = vpop.permute.xlu0 %333 }
  0xae   :  { %v367_v53 = vmul.f32 %v354_v45, %v334_v48  ;;  %v225_v39 = vmul.f32 %v215_v4, %v196_v47  ;;  %v275_v45 = vadd.f32 %v271_v30, %v181_v41 }
  0xb0   :  { %v371_v57 = vadd.f32 %v367_v53, %v273_v51 }
  0xb1   :  { %v206_v59 = vpop.permute.xlu1 %205  ;;  %v201_v60 = vpop.permute.xlu0 %200 }
  0xb2   :  { %v375_v62 = vadd.f32 %v371_v57, %v322_v56  ;;  %v226_v47 = vmul.f32 %v219_v12, %v201_v60  ;;  %v227_v50 = vmul.f32 %v223_v17, %v206_v59 }
  0xb4   :  { %v379_v2 = vmul.f32 0.5, %v375_v62 }
  0xb5   :  { %v295_v5 = vpop.permute.xlu1 %294  ;;  %v290_v6 = vpop.permute.xlu0 %289 }
  0xb6   :  { %973 = vtanh.f32 %v379_v2  ;;  %v319_v22 = vmul.f32 %v309_v3, %v290_v6  ;;  %v320_v43 = vmul.f32 %v313_v19, %v295_v5 }
  0xb8   :  { %v323_v44 = vadd.f32 %v319_v22, %v225_v39  ;;  %v324_v25 = vadd.f32 %v320_v43, %v226_v47 }
  0xb9   :  { %v339_v33 = vpop.permute.xlu1 %338  ;;  %v300_v34 = vpop.permute.xlu0 %299 }
  0xba   :  { %v368_v40 = vmul.f32 %v358_v7, %v339_v33  ;;  %v321_v29 = vmul.f32 %v317_v21, %v300_v34 }
  0xbc   :  { %v372_v15 = vadd.f32 %v368_v40, %v274_v37  ;;  %v325_v56 = vadd.f32 %v321_v29, %v227_v50 }
  0xbd   :  { %v349_v48 = vpop.permute.xlu1 %348  ;;  %v344_v49 = vpop.permute.xlu0 %343 }
  0xbe   :  { %v376_v51 = vadd.f32 %v372_v15, %v323_v44  ;;  %v370_v20 = vmul.f32 %v366_v14, %v349_v48  ;;  %v369_v52 = vmul.f32 %v362_v38, %v344_v49 }
  0xc0   :  { %v974_v53 = vpop.eup %973  ;;  %v380_v54 = vmul.f32 0.5, %v376_v51  ;;  %v374_v57 = vadd.f32 %v370_v20, %v276_v46  ;;  %v373_v58 = vadd.f32 %v369_v52, %v275_v45 }
  0xc1   :  { %v387_v62 = vmul.f32 0.5, %v974_v53  ;;  %v411_v0 = vpop.permute.xlu1 %410  ;;  %v406_v1 = vpop.permute.xlu0 %405 }
  0xc2   :  { %v378_v2 = vadd.f32 %v374_v57, %v325_v56  ;;  %v377_v36 = vadd.f32 %v373_v58, %v324_v25  ;;  %975 = vtanh.f32 %v380_v54 }
  0xc3   :  { %v391_v4 = vadd.f32 0.5, %v387_v62 }
  0xc4   :  { %v382_v60 = vmul.f32 0.5, %v378_v2  ;;  %v381_v5 = vmul.f32 0.5, %v377_v36 }
  0xc5   :  { %v421_v6 = vpop.permute.xlu1 %420  ;;  %v416_v59 = vpop.permute.xlu0 %415  ;;  %v426_v3 = vrot.slane %v391_v4, %v1350_v27  ;;  %v495_v10 = vrot.slane %v391_v4, %v1360_v35  ;;  %v589_v11 = vrot.slane %v391_v4, %v1356_v32  ;;  %v540_v13 = vrot.slane %v391_v4, %v1352_v28 }
  0xc6   :  { %977 = vtanh.f32 %v382_v60 }
  0xc7   :  { %979 = vtanh.f32 %v381_v5  ;;  %v439_v9 = vmul.f32 %v426_v3, %v406_v1 }
  0xc9   :  { %v475_v7 = vpop.permute.xlu1 %474  ;;  %v446_v8 = vpop.permute.xlu0 %445 }
  0xca   :  { %v508_v12 = vmul.f32 %v495_v10, %v475_v7  ;;  %v463_v19 = vadd.f32 %v446_v8, %v439_v9 }
  0xcc   :  { %v976_v16 = vpop.eup %975 }
  0xcd   :  { %v569_v17 = vpop.permute.xlu1 %568  ;;  %v520_v18 = vpop.permute.xlu0 %519  ;;  %v388_v24 = vmul.f32 0.5, %v976_v16 }
  0xce   :  { %v602_v22 = vmul.f32 %v589_v11, %v569_v17  ;;  %v553_v23 = vmul.f32 %v540_v13, %v520_v18 }
  0xcf   :  { %v392_v21 = vadd.f32 0.5, %v388_v24 }
  0xd0   :  { %v606_v30 = vadd.f32 %v602_v22, %v508_v12  ;;  %v557_v31 = vadd.f32 %v553_v23, %v463_v19  ;;  %v978_v33 = vpop.eup %977 }
  0xd1   :  { %v456_v34 = vpop.permute.xlu1 %455  ;;  %v451_v37 = vpop.permute.xlu0 %450  ;;  %v390_v42 = vmul.f32 0.5, %v978_v33  ;;  %v430_v15 = vrot.slane %v392_v21, %v1350_v27  ;;  %v544_v20 = vrot.slane %v392_v21, %v1352_v28  ;;  %v499_v53 = vrot.slane %v392_v21, %v1360_v35 }
  0xd2   :  { %v980_v39 = vpop.eup %979  ;;  %v610_v40 = vadd.f32 %v606_v30, %v557_v31  ;;  %v593_v56 = vrot.slane %v392_v21, %v1356_v32 }
  0xd3   :  { %v389_v43 = vmul.f32 0.5, %v980_v39  ;;  %v394_v29 = vadd.f32 0.5, %v390_v42  ;;  %v440_v47 = vmul.f32 %v430_v15, %v411_v0 }
  0xd4   :  { %v614_v41 = vmul.f32 0.5, %v610_v40 }
  0xd5   :  { %v480_v14 = vpop.permute.xlu1 %479  ;;  %v461_v44 = vpop.permute.xlu0 %460  ;;  %v393_v38 = vadd.f32 0.5, %v389_v43  ;;  %v438_v48 = vrot.slane %v394_v29, %v1350_v27  ;;  %v464_v25 = vadd.f32 %v451_v37, %v440_v47  ;;  %v507_v4 = vrot.slane %v394_v29, %v1360_v35 }
  0xd6   :  { %981 = vtanh.f32 %v614_v41  ;;  %v509_v36 = vmul.f32 %v499_v53, %v480_v14  ;;  %v552_v5 = vrot.slane %v394_v29, %v1352_v28  ;;  %v601_v8 = vrot.slane %v394_v29, %v1356_v32 }
  0xd7   :  { %v434_v49 = vrot.slane %v393_v38, %v1350_v27  ;;  %v442_v57 = vmul.f32 %v438_v48, %v421_v6  ;;  %v548_v62 = vrot.slane %v393_v38, %v1352_v28  ;;  %v503_v3 = vrot.slane %v393_v38, %v1360_v35 }
  0xd8   :  { %v597_v11 = vrot.slane %v393_v38, %v1356_v32 }
  0xd9   :  { %v490_v45 = vpop.permute.xlu1 %489  ;;  %v485_v46 = vpop.permute.xlu0 %484  ;;  %v441_v58 = vmul.f32 %v434_v49, %v416_v59  ;;  %v466_v16 = vadd.f32 %v461_v44, %v442_v57 }
  0xda   :  { %v511_v17 = vmul.f32 %v507_v4, %v490_v45  ;;  %v510_v22 = vmul.f32 %v503_v3, %v485_v46 }
  0xdb   :  { %v465_v13 = vadd.f32 %v456_v34, %v441_v58 }
  0xdd   :  { %v530_v50 = vpop.permute.xlu1 %529  ;;  %v525_v51 = vpop.permute.xlu0 %524 }
  0xde   :  { %v554_v54 = vmul.f32 %v544_v20, %v525_v51  ;;  %v555_v7 = vmul.f32 %v548_v62, %v530_v50 }
  0xe0   :  { %v982_v52 = vpop.eup %981  ;;  %v558_v10 = vadd.f32 %v554_v54, %v464_v25  ;;  %v559_v31 = vadd.f32 %v555_v7, %v465_v13 }
  0xe1   :  { %v574_v0 = vpop.permute.xlu1 %573  ;;  %v535_v1 = vpop.permute.xlu0 %534  ;;  %v622_v2 = vmul.f32 0.5, %v982_v52 }
  0xe2   :  { %v603_v60 = vmul.f32 %v593_v56, %v574_v0  ;;  %v556_v59 = vmul.f32 %v552_v5, %v535_v1 }
  0xe3   :  { %v626_v9 = vadd.f32 0.5, %v622_v2 }
  0xe4   :  { %v607_v6 = vadd.f32 %v603_v60, %v509_v36  ;;  %v560_v39 = vadd.f32 %v556_v59, %v466_v16 }
  0xe5   :  { %v584_v18 = vpop.permute.xlu1 %583  ;;  %v579_v12 = vpop.permute.xlu0 %578  ;;  %v630_v19 = vsub.f32 %v626_v9, %v1348_v26 }
  0xe6   :  { %v611_v23 = vadd.f32 %v607_v6, %v558_v10  ;;  %v605_v24 = vmul.f32 %v601_v8, %v584_v18  ;;  %v604_v30 = vmul.f32 %v597_v11, %v579_v12 }
  0xe7   :  { %v634_v33 = vmul.f32 %v630_v19, %v630_v19 }
  0xe8   :  { %v615_v37 = vmul.f32 0.5, %v611_v23  ;;  %v609_v40 = vadd.f32 %v605_v24, %v511_v17  ;;  %v608_v21 = vadd.f32 %v604_v30, %v510_v22 }
  0xe9   :  { %v645_v41 = vpop.permute.xlu0 %644  ;;  %v650_v52 = vpop.permute.xlu1 %649 }
  0xea   :  { %983 = vtanh.f32 %v615_v37  ;;  %v613_v32 = vadd.f32 %v609_v40, %v560_v39  ;;  %v612_v34 = vadd.f32 %v608_v21, %v559_v31  ;;  %v662_v42 = vmul.f32 %v645_v41, %v634_v33 }
  0xec   :  { %v617_v43 = vmul.f32 0.5, %v613_v32  ;;  %v616_v14 = vmul.f32 0.5, %v612_v34  ;;  %v667_v26 = vsel %vm666_vm0, %v662_v42, 0.0 }
  0xed   :  { %v668_v44 = vrot.slane %v667_v26, 4  ;;  %v660_v4 = vpop.permute.xlu1 %659  ;;  %v655_v5 = vpop.permute.xlu0 %654 }
  0xee   :  { %985 = vtanh.f32 %v617_v43 }
  0xef   :  { %987 = vtanh.f32 %v616_v14  ;;  %v669_v15 = vadd.f32 %v668_v44, %v667_v26 }
  0xf1   :  { %v670_v29 = vrot.slane %v669_v15, 2  ;;  %v740_v40 = vpop.permute.xlu0 %739  ;;  %v756_v34 = vpop.permute.xlu1 %755 }
  0xf2   :  { %v741_v26 = vrot.slane %v740_v40, 1 }
  0xf3   :  { %v671_v38 = vadd.f32 %v670_v29, %v669_v15  ;;  %v757_v29 = vrot.slane %v756_v34, 1 }
  0xf4   :  { %v984_v45 = vpop.eup %983 }
  0xf5   :  { %v623_v46 = vmul.f32 0.5, %v984_v45  ;;  %v672_v48 = vrot.slane %v671_v38, 1  ;;  %v773_v43 = vpop.permute.xlu0 %772 }
  0xf7   :  { %v627_v47 = vadd.f32 0.5, %v623_v46  ;;  %v673_v54 = vadd.f32 %v672_v48, %v671_v38  ;;  %v743_v48 = vrot.slane %v740_v40, 3 }
  0xf8   :  { %v986_v49 = vpop.eup %985 }
  0xf9   :  { %v988_v50 = vpop.eup %987  ;;  %v631_v51 = vsub.f32 %v627_v47, %v1379_v55  ;;  %v625_v20 = vmul.f32 0.5, %v986_v49  ;;  %989 = vrsqrt.f32 %v673_v54  ;;  %vm697_vm1 = vcmp.eq.f32.partialorder %v673_v54, inf }
  0xfa   :  { %v624_v25 = vmul.f32 0.5, %v988_v50  ;;  %v700_v39 = vand.u32 2147483648, %v673_v54  ;;  %vm699_vm2 = vcmp.eq.f32.partialorder %v673_v54, 0.0  ;;  %v742_v47 = vrot.slane %v740_v40, 2 }
  0xfb   :  { %v635_v53 = vmul.f32 %v631_v51, %v631_v51  ;;  %v629_v56 = vadd.f32 0.5, %v625_v20 }
  0xfc   :  { %v628_v57 = vadd.f32 0.5, %v624_v25 }
  0xfd   :  { %v663_v58 = vmul.f32 %v650_v52, %v635_v53  ;;  %v633_v62 = vsub.f32 %v629_v56, %v1382_v61 }
  0xfe   :  { %v632_v0 = vsub.f32 %v628_v57, %v1384_v63  ;;  %v791_v57 = vpop.permute.xlu0 %790 }
  0xff   :  { %v674_v1 = vsel %vm666_vm0, %v663_v58, 0.0  ;;  %v637_v2 = vmul.f32 %v633_v62, %v633_v62  ;;  %v759_v62 = vrot.slane %v756_v34, 3 }
 0x100   :  { %v675_v36 = vrot.slane %v674_v1, 4  ;;  %v636_v60 = vmul.f32 %v632_v0, %v632_v0  ;;  %v783_v0 = vpop.permute.xlu1 %782 }
 0x101   :  { %v665_v55 = vmul.f32 %v660_v4, %v637_v2  ;;  %v758_v4 = vrot.slane %v756_v34, 2 }
 0x102   :  { %v676_v3 = vadd.f32 %v675_v36, %v674_v1  ;;  %v664_v7 = vmul.f32 %v655_v5, %v636_v60 }
 0x103   :  { %v688_v8 = vsel %vm666_vm0, %v665_v55, 0.0  ;;  %v990_v17 = vpop.eup %989 }
 0x104   :  { %v677_v9 = vrot.slane %v676_v3, 2  ;;  %v689_v10 = vrot.slane %v688_v8, 4  ;;  %v681_v6 = vsel %vm666_vm0, %v664_v7, 0.0  ;;  %v696_v24 = vmul.f32 %v990_v17, %v673_v54 }
 0x105   :  { %v682_v61 = vrot.slane %v681_v6, 4 }
 0x106   :  { %v678_v59 = vadd.f32 %v677_v9, %v676_v3  ;;  %v690_v63 = vadd.f32 %v689_v10, %v688_v8  ;;  %v698_v37 = vsel %vm697_vm1, %v673_v54, %v696_v24 }
 0x107   :  { %v683_v11 = vadd.f32 %v682_v61, %v681_v6  ;;  %v701_v21 = vsel %vm699_vm2, %v700_v39, %v698_v37 }
 0x108   :  { %v679_v13 = vrot.slane %v678_v59, 1  ;;  %v691_v16 = vrot.slane %v690_v63, 2  ;;  %v748_v32 = vsub.f32 %v701_v21, %v740_v40 }
 0x109   :  { %v684_v18 = vrot.slane %v683_v11, 2 }
 0x10a   :  { %v680_v12 = vadd.f32 %v679_v13, %v678_v59  ;;  %v692_v19 = vadd.f32 %v691_v16, %v690_v63  ;;  %v1444_v38 = vmul.f32 %v756_v34, %v748_v32 }
 0x10b   :  { %v685_v22 = vadd.f32 %v684_v18, %v683_v11 }
 0x10c   :  { %v693_v23 = vrot.slane %v692_v19, 1  ;;  %991 = vrsqrt.f32 %v680_v12  ;;  %vm704_vm3 = vcmp.eq.f32.partialorder %v680_v12, inf  ;;  %v707_v14 = vand.u32 2147483648, %v680_v12 }
 0x10d   :  { %v686_v30 = vrot.slane %v685_v22, 1  ;;  %vm706_vm6 = vcmp.eq.f32.partialorder %v680_v12, 0.0  ;;  %v778_v54 = vrot.slane %v1444_v38, %v1350_v27 }
 0x10e   :  { %v694_v31 = vadd.f32 %v693_v23, %v692_v19 }
 0x10f   :  { %v687_v33 = vadd.f32 %v686_v30, %v685_v22  ;;  %v779_v8 = vmul.f32 %v778_v54, %v773_v43 }
 0x110   :  { %993 = vrsqrt.f32 %v694_v31  ;;  %vm718_vm9 = vcmp.eq.f32.partialorder %v694_v31, inf  ;;  %vm720_vm10 = vcmp.eq.f32.partialorder %v694_v31, 0.0  ;;  %v721_v20 = vand.u32 2147483648, %v694_v31 }
 0x111   :  { %995 = vrsqrt.f32 %v687_v33  ;;  %vm711_vm11 = vcmp.eq.f32.partialorder %v687_v33, inf  ;;  %v714_v52 = vand.u32 2147483648, %v687_v33  ;;  %vm713_vm12 = vcmp.eq.f32.partialorder %v687_v33, 0.0 }
 0x116   :  { %v992_v41 = vpop.eup %991 }
 0x117   :  { %v703_v42 = vmul.f32 %v992_v41, %v680_v12 }
 0x119   :  { %v705_v44 = vsel %vm704_vm3, %v680_v12, %v703_v42 }
 0x11a   :  { %v994_v15 = vpop.eup %993  ;;  %v708_v45 = vsel %vm706_vm6, %v707_v14, %v705_v44 }
 0x11b   :  { %v996_v46 = vpop.eup %995  ;;  %v749_v49 = vsub.f32 %v708_v45, %v741_v26  ;;  %v717_v50 = vmul.f32 %v994_v15, %v694_v31  ;;  %v728_v36 = vsel %vm727_vm4, %v708_v45, %v701_v21 }
 0x11c   :  { %v710_v51 = vmul.f32 %v996_v46, %v687_v33 }
 0x11d   :  { %v1446_v25 = vmul.f32 %v757_v29, %v749_v49  ;;  %v719_v53 = vsel %vm718_vm9, %v694_v31, %v717_v50 }
 0x11e   :  { %v712_v56 = vsel %vm711_vm11, %v687_v33, %v710_v51  ;;  %v722_v58 = vsel %vm720_vm10, %v721_v20, %v719_v53 }
 0x11f   :  { %v715_v1 = vsel %vm713_vm12, %v714_v52, %v712_v56  ;;  %v751_v2 = vsub.f32 %v722_v58, %v743_v48  ;;  %v796_v5 = vrot.slane %v1446_v25, %v1350_v27 }
 0x120   :  { %v750_v60 = vsub.f32 %v715_v1, %v742_v47  ;;  %v730_v55 = vsel %vm729_vm5, %v715_v1, %v728_v36 }
 0x121   :  { %v767_v3 = vmul.f32 %v759_v62, %v751_v2  ;;  %v732_v7 = vsel %vm731_vm7, %v722_v58, %v730_v55 }
 0x122   :  { %v766_v9 = vmul.f32 %v758_v4, %v750_v60  ;;  %735 = vst.msk [vmem:[#allocation2] sm:$0xf] %vm734_vm8, %v732_v7 }
 0x123   :  { %v821_v10 = vrot.slane %v767_v3, %v1350_v27 }
 0x124   :  { %1014 = shalt.err (!%p1011_p4)
}
 0x125   :  { %s1015_s25 = scalar_lea.hbm %s1505_s14, 64 }
 0x126   :  { %p1016_p5 = scmp.ne.s32.totalorder %s1505_s14, %s1015_s25  ;;  %p1019_p6 = scmp.lt.u32.totalorder %s1015_s25, %s1505_s14 }
 0x128   :  { %p1021_p7 = pnand %p1019_p6, %p1016_p5 }
 0x12a   :  { %1024 = shalt.err (!%p1021_p7)
}
 0x12b   :  { %916 = dma.vmem_to_hbm [thread:$0]  %s914_s22, 64, %s1505_s14, [#allocation3]   ;;  %v808_v6 = vrot.slane %v766_v9, %v1350_v27  ;;  %v816_v61 = vpop.permute.xlu0 %815  ;;  %v803_v59 = vpop.permute.xlu1 %802  ;;  %v797_v63 = vmul.f32 %v796_v5, %v791_v57  ;;  %v785_v13 = vadd.f32 %v783_v0, %v779_v8  ;;  %v881_v44 = vrot.slane %v1446_v25, 7 }
 0x12c   :  { %v822_v11 = vmul.f32 %v821_v10, %v816_v61  ;;  %v883_v15 = vrot.slane %v766_v9, 6  ;;  %v885_v45 = vrot.slane %v767_v3, 5  ;;  %s1053_s14 = smov [#allocation4]   ;;  %vm905_vm14 = vcmask 57344  }
 0x12d   :  { %v809_v16 = vmul.f32 %v808_v6, %v803_v59  ;;  %s923_s4 = sshll.u32 %s1053_s14, 4  ;;  %s924_s4 = int_to_ptr.vmem [resolvable:$true] %s923_s4 }
 0x12e   :  { %v823_v17 = vadd.f32 %v822_v11, %v797_v63  ;;  %s1025_s11 = scalar_lea.vmem %s924_s4, 16  ;;  %s1029_s28 = scalar_lea.vmem %s924_s4, 32 }
 0x12f   :  { %v810_v18 = vadd.f32 %v809_v16, %v785_v13  ;;  %v834_v24 = vpop.permute.xlu1 %833  ;;  %v844_v31 = vpop.permute.xlu0 %843  ;;  %p1026_p8 = scmp.ne.s32.totalorder %s924_s4, %s1025_s11  ;;  %p1030_p9 = scmp.lt.s32.totalorder %s924_s4, %s924_s4 }
 0x130   :  { %p1031_p10 = scmp.lt.s32.totalorder %s1029_s28, %s1025_s11 }
 0x131   :  { %v824_v12 = vadd.f32 %v823_v17, %v810_v18 }
 0x132   :  { %p1032_p11 = por %p1031_p10, %p1030_p9 }
 0x133   :  { %v825_v19 = vmul.f32 0.5, %v824_v12  ;;  %v864_v21 = vpop.permute.xlu1 %863  ;;  %v852_v34 = vpop.permute.xlu0 %851 }
 0x134   :  { %p1033_p12 = pnand %p1032_p11, %p1026_p8 }
 0x135   :  { %997 = vtanh.f32 %v825_v19 }
 0x13f   :  { %v998_v22 = vpop.eup %997 }
 0x140   :  { %v827_v23 = vmul.f32 0.5, %v998_v22 }
 0x142   :  { %v828_v30 = vadd.f32 0.5, %v827_v23 }
 0x144   :  { %v869_v33 = vrot.slane %v828_v30, %v1352_v28  ;;  %v839_v37 = vrot.slane %v828_v30, %v1350_v27  ;;  %v857_v40 = vrot.slane %v828_v30, %v1360_v35  ;;  %v882_v27 = vsel %vm727_vm4, %v881_v44, %v1444_v38 }
 0x145   :  { %v884_v35 = vsel %vm729_vm5, %v883_v15, %v882_v27 }
 0x146   :  { %v840_v39 = vmul.f32 %v839_v37, %v834_v24  ;;  %v870_v41 = vmul.f32 %v869_v33, %v864_v21  ;;  %v858_v43 = vmul.f32 %v857_v40, %v852_v34  ;;  %v886_v47 = vsel %vm731_vm7, %v885_v45, %v884_v35 }
 0x148   :  { %v846_v32 = vadd.f32 %v844_v31, %v840_v39 }
 0x14a   :  { %v871_v42 = vadd.f32 %v870_v41, %v846_v32 }
 0x14c   :  { %v872_v14 = vadd.f32 %v871_v42, %v858_v43 }
 0x14e   :  { %v873_v26 = vmul.f32 0.5, %v872_v14 }
 0x150   :  { %999 = vtanh.f32 %v873_v26 }
 0x15a   :  { %v1000_v29 = vpop.eup %999 }
 0x15b   :  { %v875_v28 = vmul.f32 0.5, %v1000_v29 }
 0x15d   :  { %v876_v46 = vadd.f32 0.5, %v875_v28 }
 0x15f   :  { %v888_v48 = vsub.f32 %v876_v46, %v886_v47 }
 0x161   :  { %v889_v49 = vmul.f32 %v888_v48, %v888_v48 }
 0x163   :  { %v890_v50 = vsel %vm734_vm8, %v889_v49, 0.0 }
 0x164   :  { %v891_v51 = vrot.slane %v890_v50, 4 }
 0x166   :  { %v892_v20 = vadd.f32 %v891_v51, %v890_v50 }
 0x168   :  { %v893_v52 = vrot.slane %v892_v20, 2 }
 0x16a   :  { %v894_v25 = vadd.f32 %v893_v52, %v892_v20 }
 0x16c   :  { %v895_v53 = vrot.slane %v894_v25, 1 }
 0x16e   :  { %v896_v54 = vadd.f32 %v895_v53, %v894_v25 }
 0x170   :  { %v897_v56 = vmul.f32 0.25, %v896_v54 }
 0x172   :  { %1001 = vrsqrt.f32 %v897_v56  ;;  %vm900_vm13 = vcmp.eq.f32.partialorder %v897_v56, inf  ;;  %v903_v58 = vand.u32 2147483648, %v897_v56  ;;  %vm902_vm15 = vcmp.eq.f32.partialorder %v897_v56, 0.0 }
 0x17c   :  { %v1002_v57 = vpop.eup %1001 }
 0x17d   :  { %v899_v38 = vmul.f32 %v1002_v57, %v897_v56 }
 0x17f   :  { %v901_v62 = vsel %vm900_vm13, %v897_v56, %v899_v38 }
 0x180   :  { %v904_v0 = vsel %vm902_vm15, %v903_v58, %v901_v62 }
 0x181   :  { %906 = vst.msk [vmem:[#allocation4] sm:$0x1] %vm905_vm14, %v904_v0 }
 0x182   :  { %1036 = shalt.err (!%p1033_p12)
}
 0x183   :  { %s1037_s16 = scalar_lea.hbm %s1506_s15, 16 }
 0x184   :  { %p1038_p13 = scmp.ne.s32.totalorder %s1506_s15, %s1037_s16  ;;  %p1041_p0 = scmp.lt.u32.totalorder %s1037_s16, %s1506_s15 }
 0x186   :  { %p1043_p1 = pnand %p1041_p0, %p1038_p13 }
 0x188   :  { %1046 = shalt.err (!%p1043_p1)
}
 0x189   :  { %926 = dma.vmem_to_hbm [thread:$0]  %s924_s4, 16, %s1506_s15, [#allocation5]  }
 0x18a   :  { %1047 = dma.done.wait [#allocation3], 64  }
 0x18b   :  { %1048 = vsyncadd [#allocation3], 4294967232 }
 0x18c   :  { %1049 = dma.done.wait [#allocation5], 16  }
 0x18d   :  { %1050 = vsyncadd [#allocation5], 4294967280 }
 0x18e   :  { %933 = vsyncpa [#allocation3], 1 }
 0x18f   :  { %934 = vsyncpa [#allocation5], 1 }

</bundles_post_ra>
